<compile_context>
chip_gen: v7x
topology: tpu7x:2x2x1
jax: 0.10.0
libtpu: 0.0.40
codegen_flags: <defaults>
</compile_context>

<pallas_src>
import jax
import jax.numpy as jnp
from jax.experimental import pallas as pl
from jax.experimental.pallas import tpu as pltpu


def _round_up(n, m):
    return ((n + m - 1) // m) * m


def _mlp_kernel(x_ref, w1_ref, b1_ref, w2_ref, b2_ref, o_ref):
    # In-kernel bf16 cast of the activation tile (avoids a separate XLA convert
    # pass over x in HBM); MXU accumulates in f32.
    x_bf = x_ref[...].astype(jnp.bfloat16)
    h = jnp.dot(x_bf, w1_ref[...], preferred_element_type=jnp.float32)
    # Bias + ReLU stay f32 on the VPU (important on v5e: no bf16 VALUs).
    h = jnp.maximum(h + b1_ref[...], 0.0)
    # Second linear: re-cast activations to bf16 for the MXU, accumulate f32.
    y = jnp.dot(h.astype(jnp.bfloat16), w2_ref[...],
                preferred_element_type=jnp.float32)
    # Narrow (TB, C) store: only the C useful lanes are written back.
    o_ref[...] = (y + b2_ref[...]).astype(o_ref.dtype)


def _vmem_budget():
    """Returns (vmem_limit_bytes, tile_budget_bytes) with headroom per chip."""
    cap = 64 << 20                       # conservative floor (v7x: 64 MiB / TC)
    try:
        cap = int(pltpu.get_tpu_info().vmem_capacity_bytes)
    except Exception:                    # query unavailable -> keep the floor
        pass
    vmem_limit = min(int(cap * 0.75), 96 << 20)   # v7x ~48 MiB, v5e/v6e 96 MiB
    tile_budget = vmem_limit // 2                 # leave room for compiler temps
    return vmem_limit, tile_budget


def _pick_batch_tile(B, D, H, C, tile_budget, block_b):
    """Largest sublane-aligned batch tile that fits the VMEM tile budget."""
    if B <= 8:
        return B                         # single block == full (tiny) batch dim
    c_eff = max(C, 128)                  # lane-padded VMEM footprint
    # Steady-state bytes per batch row: double-buffered f32 x tile, f32 hidden
    # activations, double-buffered output tile.
    per_row = 2 * 4 * D + 4 * H + 2 * 4 * c_eff
    # Resident (double-buffered) weights / biases.
    resident = 2 * (D * H * 2 + H * 4 + H * c_eff * 2 + c_eff * 4)
    avail = max(tile_budget - resident, 8 * per_row)
    tb = max(8, (avail // per_row) // 8 * 8)
    # Cap so the batch grid has >=2 steps -> v7x's 2 TCs split the parallel axis.
    tb = min(tb, block_b, max(8, _round_up(pl.cdiv(B, 2), 8)), _round_up(B, 8))
    return tb


def simple_mlp_forward(x, w1, b1, w2, b2, *, block_b=2048):
    """x: [B, D] f32; w1: [D, H]; b1: [H]; w2: [H, C]; b2: [C] -> [B, C] f32."""
    B, D = x.shape
    H = w1.shape[1]
    C = w2.shape[1]

    vmem_limit, tile_budget = _vmem_budget()
    TB = _pick_batch_tile(B, D, H, C, tile_budget, block_b)
    grid = (pl.cdiv(B, TB),)

    # One-time (tiny) bf16 cast of the resident weights; biases stay f32.
    w1_bf = w1.astype(jnp.bfloat16)
    w2_bf = w2.astype(jnp.bfloat16)
    b1_2d = b1.reshape(1, H).astype(jnp.float32)
    b2_2d = b2.reshape(1, C).astype(jnp.float32)
    # TODO(synk): optional v7x fp8 path for x/w1 (halves the dominant HBM read
    # stream again) left out pending a per-tensor-scaling accuracy check.
    # NOTE: pipeline_mode=pl.Buffered(1) on the constant-index weight specs
    # would halve their resident VMEM; skipped here for lowering portability
    # and accounted for instead in the TB budget above.

    flops = 2 * B * (D * H + H * C)
    bytes_accessed = (x.size * 4 + w1_bf.size * 2 + w2_bf.size * 2
                      + b1_2d.size * 4 + b2_2d.size * 4 + B * C * 4)

    out = pl.pallas_call(
        _mlp_kernel,
        out_shape=jax.ShapeDtypeStruct((B, C), jnp.float32),
        grid=grid,
        in_specs=[
            pl.BlockSpec((TB, D), lambda i: (i, 0)),     # x: batch-tiled, f32
            pl.BlockSpec((D, H), lambda i: (0, 0)),      # w1: VMEM-resident
            pl.BlockSpec((1, H), lambda i: (0, 0)),      # b1: VMEM-resident
            pl.BlockSpec((H, C), lambda i: (0, 0)),      # w2: VMEM-resident
            pl.BlockSpec((1, C), lambda i: (0, 0)),      # b2: VMEM-resident
        ],
        out_specs=pl.BlockSpec((TB, C), lambda i: (i, 0)),
        compiler_params=pltpu.CompilerParams(
            dimension_semantics=("parallel",),           # megacore split on v7x
            vmem_limit_bytes=vmem_limit),
        cost_estimate=pl.CostEstimate(
            flops=flops, transcendentals=0, bytes_accessed=bytes_accessed),
    )(x, w1_bf, b1_2d, w2_bf, b2_2d)
    return out


def init_params(key, input_dim, hidden=128, num_classes=3, dtype=jnp.float32):
    """Deterministic parameter init matching SimpleMLP.__init__ shapes."""
    k1, k2, k3, k4 = jax.random.split(key, 4)
    # PyTorch nn.Linear stores weight as (out, in); we store transposed (in, out).
    scale1 = 1.0 / jnp.sqrt(input_dim)
    scale2 = 1.0 / jnp.sqrt(hidden)
    w1 = jax.random.uniform(k1, (input_dim, hidden), dtype, -scale1, scale1)
    b1 = jax.random.uniform(k2, (hidden,), dtype, -scale1, scale1)
    w2 = jax.random.uniform(k3, (hidden, num_classes), dtype, -scale2, scale2)
    b2 = jax.random.uniform(k4, (num_classes,), dtype, -scale2, scale2)
    return w1, b1, w2, b2


if __name__ == "__main__":
    key = jax.random.PRNGKey(0)
    kx, kp = jax.random.split(key)

    batch = 8
    input_dim = 32
    num_classes = 3

    x = jax.random.normal(kx, (batch, input_dim), jnp.float32)
    w1, b1, w2, b2 = init_params(kp, input_dim, hidden=128,
                                 num_classes=num_classes)

    out = jax.block_until_ready(simple_mlp_forward(x, w1, b1, w2, b2))

    # Pure-JAX f32 reference of the same math (kernel uses bf16 MXU operands
    # with f32 accumulation -> small, bounded deviation).
    ref = jnp.maximum(x @ w1 + b1, 0.0) @ w2 + b2
    assert out.shape == (batch, num_classes)
    err = float(jnp.max(jnp.abs(out - ref)))
    assert jnp.allclose(out, ref, atol=5e-2, rtol=5e-2), err

    print("KERNEL_OK")
</pallas_src>

<mosaic_0001>
module attributes {stable_mosaic.version = 11 : i64} {
  func.func @_mlp_kernel(%arg0: i32, %arg1: memref<8x32xf32, #tpu.memory_space<vmem>>, %arg2: memref<32x128xbf16, #tpu.memory_space<vmem>>, %arg3: memref<1x128xf32, #tpu.memory_space<vmem>>, %arg4: memref<128x3xbf16, #tpu.memory_space<vmem>>, %arg5: memref<1x3xf32, #tpu.memory_space<vmem>>, %arg6: memref<8x3xf32, #tpu.memory_space<vmem>>) attributes {dimension_semantics = [#tpu.dimension_semantics<parallel>], iteration_bounds = array<i64: 1>, scalar_prefetch = 0 : i64, scratch_operands = 0 : i64, tpu.core_type = #tpu.core_type<tc>, window_params = [{transform_indices = @transform_0, window_bounds = array<i64: 8, 32>}, {pipeline_mode = #tpu.pipeline_mode<synchronous>, transform_indices = @transform_1, window_bounds = array<i64: 32, 128>}, {pipeline_mode = #tpu.pipeline_mode<synchronous>, transform_indices = @transform_2, window_bounds = array<i64: 1, 128>}, {pipeline_mode = #tpu.pipeline_mode<synchronous>, transform_indices = @transform_3, window_bounds = array<i64: 128, 3>}, {pipeline_mode = #tpu.pipeline_mode<synchronous>, transform_indices = @transform_4, window_bounds = array<i64: 1, 3>}, {transform_indices = @transform_5, window_bounds = array<i64: 8, 3>}]} {
    %c0 = arith.constant 0 : index
    %c0_0 = arith.constant 0 : index
    %0 = vector.load %arg1[%c0, %c0_0] : memref<8x32xf32, #tpu.memory_space<vmem>>, vector<8x32xf32>
    %1 = arith.truncf %0 : vector<8x32xf32> to vector<8x32xbf16>
    %c0_1 = arith.constant 0 : index
    %c0_2 = arith.constant 0 : index
    %2 = vector.load %arg2[%c0_1, %c0_2] : memref<32x128xbf16, #tpu.memory_space<vmem>>, vector<32x128xbf16>
    %cst = arith.constant dense<0.000000e+00> : vector<8x128xf32>
    %3 = tpu.matmul %1, %2, %cst {dimension_numbers = #tpu.dot_dimension_numbers<[1], [0], [0], [1], [0, 0, 1, 1], [], []>} : vector<8x32xbf16>, vector<32x128xbf16>, vector<8x128xf32> -> vector<8x128xf32>
    %c0_3 = arith.constant 0 : index
    %c0_4 = arith.constant 0 : index
    %4 = vector.load %arg3[%c0_3, %c0_4] : memref<1x128xf32, #tpu.memory_space<vmem>>, vector<1x128xf32>
    %5 = vector.broadcast %4 : vector<1x128xf32> to vector<8x128xf32>
    %6 = arith.addf %3, %5 : vector<8x128xf32>
    %cst_5 = arith.constant 0.000000e+00 : f32
    %7 = vector.broadcast %cst_5 : f32 to vector<8x128xf32>
    %8 = arith.maximumf %6, %7 : vector<8x128xf32>
    %9 = arith.truncf %8 : vector<8x128xf32> to vector<8x128xbf16>
    %c0_6 = arith.constant 0 : index
    %c0_7 = arith.constant 0 : index
    %10 = vector.load %arg4[%c0_6, %c0_7] : memref<128x3xbf16, #tpu.memory_space<vmem>>, vector<128x3xbf16>
    %cst_8 = arith.constant dense<0.000000e+00> : vector<8x3xf32>
    %11 = tpu.matmul %9, %10, %cst_8 {dimension_numbers = #tpu.dot_dimension_numbers<[1], [0], [0], [1], [0, 0, 1, 1], [], []>} : vector<8x128xbf16>, vector<128x3xbf16>, vector<8x3xf32> -> vector<8x3xf32>
    %c0_9 = arith.constant 0 : index
    %c0_10 = arith.constant 0 : index
    %12 = vector.load %arg5[%c0_9, %c0_10] : memref<1x3xf32, #tpu.memory_space<vmem>>, vector<1x3xf32>
    %13 = vector.broadcast %12 : vector<1x3xf32> to vector<8x3xf32>
    %14 = arith.addf %11, %13 : vector<8x3xf32>
    %c0_11 = arith.constant 0 : index
    %c0_12 = arith.constant 0 : index
    %15 = vector.load %arg6[%c0_11, %c0_12] : memref<8x3xf32, #tpu.memory_space<vmem>>, vector<8x3xf32>
    tpu.vector_store %arg6[%c0_11, %c0_12], %14 {strides = array<i32>} : memref<8x3xf32, #tpu.memory_space<vmem>>, vector<8x3xf32>,
    return
  }
  func.func @transform_0(%arg0: i32) -> (i32, i32) {
    %c0_i32 = arith.constant 0 : i32
    %c0_i32_0 = arith.constant 0 : i32
    return %arg0, %c0_i32 : i32, i32
  }
  func.func @transform_1(%arg0: i32) -> (i32, i32) {
    %c0_i32 = arith.constant 0 : i32
    %c0_i32_0 = arith.constant 0 : i32
    %c0_i32_1 = arith.constant 0 : i32
    return %c0_i32, %c0_i32_0 : i32, i32
  }
  func.func @transform_2(%arg0: i32) -> (i32, i32) {
    %c0_i32 = arith.constant 0 : i32
    %c0_i32_0 = arith.constant 0 : i32
    %c0_i32_1 = arith.constant 0 : i32
    return %c0_i32, %c0_i32_0 : i32, i32
  }
  func.func @transform_3(%arg0: i32) -> (i32, i32) {
    %c0_i32 = arith.constant 0 : i32
    %c0_i32_0 = arith.constant 0 : i32
    %c0_i32_1 = arith.constant 0 : i32
    return %c0_i32, %c0_i32_0 : i32, i32
  }
  func.func @transform_4(%arg0: i32) -> (i32, i32) {
    %c0_i32 = arith.constant 0 : i32
    %c0_i32_0 = arith.constant 0 : i32
    %c0_i32_1 = arith.constant 0 : i32
    return %c0_i32, %c0_i32_0 : i32, i32
  }
  func.func @transform_5(%arg0: i32) -> (i32, i32) {
    %c0_i32 = arith.constant 0 : i32
    %c0_i32_0 = arith.constant 0 : i32
    return %arg0, %c0_i32 : i32, i32
  }
}

</mosaic_0001>

<bundles_post_ra>
// kernel: tpu_custom_call.1
= control target key start
LH: loop header
LB: loop body
LE: loop exit
PB: predicated region body
PF: predicated region fallthrough
CT: control target
= control target key end

     0   :  { %v274_v0 = vmov 0.0   ;;  %vm275_vm0 = vmmov 0   ;;  %vm46_vm1 = vcmask 261120   ;;  %vm203_vm2 = vcmask 23552   ;;  %s348_s1 = inlined_call_operand.vmem [shape: bf16[32,128], index: 1, kind: input, shape index: {}]   ;;  %s349_s0 = inlined_call_operand.vmem [shape: f32[8,32], index: 0, kind: input, shape index: {}]   ;;  %s350_s3 = inlined_call_operand.vmem [shape: bf16[128,3], index: 3, kind: input, shape index: {}]   ;;  %s351_s2 = inlined_call_operand.vmem [shape: f32[1,128], index: 2, kind: input, shape index: {}]   ;;  %s352_s4 = inlined_call_operand.vmem [shape: f32[1,3], index: 4, kind: input, shape index: {}]   ;;  %s353_s5 = inlined_call_operand.vmem [shape: f32[8,3], index: 5, kind: output, shape index: {}]  }
   0x1   :  { %234 = vmatprep.subr.bf16.mxu0 %v274_v0  ;;  %v264_v1 = vld [vmem:[%s348_s1] sm:$0xff]   ;;  %238 = vmatprep.mubr.msk.bf16.mxu0 %vm275_vm0, %v274_v0  ;;  %v265_v2 = vld [vmem:[%s348_s1 + $0x8] sm:$0xff]   ;;  %v268_v7 = vld [vmem:[%s350_s3 + $0x10] sm:$0xff]  }
   0x2   :  { %242 = vmatprep.subr.bf16.mxu1 %v274_v0  ;;  %258 = vmatprep.mubr.msk.bf16.mxu1 %vm275_vm0, %v274_v0  ;;  %v21_v3 = vld [vmem:[%s349_s0] sm:$0xff]  ;;  %v267_v6 = vld [vmem:[%s350_s3 + $0x8] sm:$0xff]   ;;  %v269_v8 = vld [vmem:[%s350_s3 + $0x18] sm:$0xff]  }
   0x3   :  { %235 = vmatpush3.bf16.msra.mxu0 %v264_v1  ;;  %v266_v4 = vld [vmem:[%s350_s3] sm:$0xff]   ;;  %v22_v5 = vpack.c.bf16 %v21_v3, %v21_v3  ;;  %v271_v10 = vld [vmem:[%s350_s3 + $0x28] sm:$0xff]   ;;  %v272_v11 = vld [vmem:[%s350_s3 + $0x30] sm:$0xff]  }
   0x4   :  { %236 = vmatprep.subr.bf16.mxu0 %v274_v0  ;;  %243 = vmatpush3.bf16.msra.mxu1 %v266_v4  ;;  %v270_v9 = vld [vmem:[%s350_s3 + $0x20] sm:$0xff]   ;;  %v273_v12 = vld [vmem:[%s350_s3 + $0x38] sm:$0xff]  }
   0x5   :  { %244 = vmatprep.subr.bf16.mxu1 %v274_v0  ;;  %v209_v13 = vld [vmem:[%s351_s2] ss:$0 sm:$0xff] }
   0x6   :  { %v213_v21 = vld [vmem:[%s352_s4] ss:$0 sm:$0xff] }
   0x7   :  { %237 = vmatpush3.bf16.msra.mxu0 %v265_v2 }
   0x8   :  { %245 = vmatpush3.bf16.msra.mxu1 %v267_v6 }
   0x9   :  { %246 = vmatprep.subr.bf16.mxu1 %v274_v0 }
   0xa   :  { %239 = vmatmul.mubr.msk.bf16.vlgmr.msra.gmra.mrb[0].mxu0 %vm46_vm1, %v22_v5 }
   0xc   :  { %247 = vmatpush3.bf16.msra.mxu1 %v268_v7 }
   0xd   :  { %248 = vmatprep.subr.bf16.mxu1 %v274_v0 }
  0x10   :  { %249 = vmatpush3.bf16.msra.mxu1 %v269_v8 }
  0x11   :  { %250 = vmatprep.subr.bf16.mxu1 %v274_v0 }
  0x14   :  { %251 = vmatpush3.bf16.msra.mxu1 %v270_v9 }
  0x15   :  { %252 = vmatprep.subr.bf16.mxu1 %v274_v0 }
  0x18   :  { %253 = vmatpush3.bf16.msra.mxu1 %v271_v10 }
  0x19   :  { %254 = vmatprep.subr.bf16.mxu1 %v274_v0 }
  0x1c   :  { %255 = vmatpush3.bf16.msra.mxu1 %v272_v11 }
  0x1d   :  { %256 = vmatprep.subr.bf16.mxu1 %v274_v0 }
  0x20   :  { %257 = vmatpush3.bf16.msra.mxu1 %v273_v12 }
  0xdd   :  { %v84_v14 = vpop.f32.mrb[0].mxu0 }
  0xde   :  { %v85_v15 = vadd.f32 %v209_v13, %v84_v14  ;;  %v240_v16 = vpop.f32.mrb[1].mxu0 }
  0xdf   :  { %v87_v17 = vpop.f32.mrb[2].mxu0 }
  0xe0   :  { %v90_v18 = vmax.f32 %v85_v15, 0.0  ;;  %v241_v19 = vpop.f32.mrb[3].mxu0 }
  0xe2   :  { %v91_v20 = vpack.c.bf16 %v90_v18, %v90_v18 }
  0xe4   :  { %259 = vmatmul.mubr.bf16.vlgmr.msra.gmra.mrb[0].mxu1 %v91_v20 }
 0x1b7   :  { %v197_v22 = vpop.f32.mrb[0].mxu1 }
 0x1b8   :  { %v198_v23 = vadd.f32 %v213_v21, %v197_v22  ;;  %v260_v24 = vpop.f32.mrb[1].mxu1 }
 0x1b9   :  { %v200_v25 = vpop.f32.mrb[2].mxu1 }
 0x1ba   :  { %204 = vst.msk [vmem:[%s353_s5] sm:$0xff] %vm203_vm2, %v198_v23  ;;  %v261_v26 = vpop.f32.mrb[3].mxu1 }

</bundles_post_ra>
